<compile_context>
chip_gen: v6e
topology: v6e:2x2x1
jax: 0.10.0
libtpu: 0.0.40
codegen_flags: <defaults>
</compile_context>

<pallas_src>
import numpy as np
import jax
import jax.numpy as jnp
from jax.experimental import pallas as pl
from jax.experimental.pallas import tpu as pltpu


def _gaussian_taps(size: int, sigma: float) -> np.ndarray:
    """1D Gaussian taps matching cv2.getGaussianKernel(size, sigma) (float64, sums to 1)."""
    i = np.arange(size, dtype=np.float64)
    c = (size - 1) / 2.0
    k1 = np.exp(-((i - c) ** 2) / (2.0 * sigma ** 2))
    k1 /= k1.sum()
    return k1


def fspecial_gaussian(size: int, sigma: float) -> np.ndarray:
    """Replicates cv2.getGaussianKernel(size, sigma) outer-product (MATLAB fspecial)."""
    k1 = _gaussian_taps(size, sigma)
    return np.outer(k1, k1).astype(np.float32)


def _band_matrix(n: int, taps: np.ndarray, pad: int) -> np.ndarray:
    """B[i, j] = taps[j - i + pad] for |i - j| <= pad else 0 (zero-padded 'same' conv)."""
    m = np.zeros((n, n), dtype=np.float32)
    for i in range(n):
        for k in range(len(taps)):
            j = i + k - pad
            if 0 <= j < n:
                m[i, j] = float(taps[k])
    return m


def _roundup(a: int, b: int) -> int:
    return (a + b - 1) // b * b


def _blur_kernel(x_ref, bh_ref, bwt_ref, o_ref):
    # x_ref:   (TC, H, W)  input planes (caller dtype)
    # bh_ref:  (H, H)      banded Gaussian along H (f32)
    # bwt_ref: (W, W)      banded Gaussian along W, already transposed (f32)
    # o_ref:   (TC, H, W)  output planes
    tc = x_ref.shape[0]
    x = x_ref[...].astype(jnp.float32)

    # Broadcast the small band matrices across the plane-batch once (hoisted, no loop).
    bwt = jnp.broadcast_to(bwt_ref[...], (tc,) + bwt_ref.shape)
    bh = jnp.broadcast_to(bh_ref[...], (tc,) + bh_ref.shape)

    # Horizontal (W) pass on the MXU: tmp[t, h, v] = sum_w x[t, h, w] * Bw[v, w]
    tmp = jnp.einsum(
        "thw,twv->thv", x, bwt,
        preferred_element_type=jnp.float32,
        precision=jax.lax.Precision.HIGHEST,
    )
    # Vertical (H) pass on the MXU: out[t, h, w] = sum_k Bh[h, k] * tmp[t, k, w]
    out = jnp.einsum(
        "thk,tkw->thw", bh, tmp,
        preferred_element_type=jnp.float32,
        precision=jax.lax.Precision.HIGHEST,
    )
    o_ref[...] = out.astype(o_ref.dtype)


def gaussian_blur_conv(x: jax.Array, truncate: int = 4, sigma: float = 1.5) -> jax.Array:
    """Forward pass of GaussianBlurConv: depthwise 'same' conv with a Gaussian kernel."""
    size = 2 * int(truncate * sigma + 0.5) + 1          # = 13
    pad = (size - 1) // 2                               # = 6
    N, C, H, W = x.shape
    NC = N * C
    taps = _gaussian_taps(size, sigma)

    bh = _band_matrix(H, taps, pad)                      # (H, H): vertical band
    bwt = _band_matrix(W, taps, pad).T.copy()            # (W, W): horizontal band, transposed

    out_dtype = x.dtype if jnp.issubdtype(x.dtype, jnp.floating) else jnp.float32
    xf = x.reshape(NC, H, W)                             # one (batch, channel) plane per row

    # ---- generation-aware tiling over (batch, channel) planes --------------------------
    in_bytes = jnp.dtype(x.dtype).itemsize
    out_bytes = jnp.dtype(out_dtype).itemsize
    H8, W128 = _roundup(H, 8), _roundup(W, 128)          # VMEM (sublane, lane) padding
    band_bytes = (_roundup(H, 8) * _roundup(H, 128) + _roundup(W, 8) * _roundup(W, 128)) * 4
    per_plane = (
        2 * H8 * W128 * in_bytes       # input block, double-buffered
        + 2 * H8 * W128 * out_bytes    # output block, double-buffered
        + 2 * H8 * W128 * 4            # f32 intermediates (tmp / out values)
        + band_bytes                   # broadcast band matrices per plane
    )
    try:
        vmem_cap = int(pltpu.get_tpu_info().vmem_capacity_bytes)
    except Exception:
        vmem_cap = 64 * 1024 * 1024    # conservative (v7x per-TC) fallback
    budget = int(vmem_cap * 0.4)                         # working-set budget per grid step
    vmem_limit = min(int(vmem_cap * 0.6), 100 * 1024 * 1024)

    tc = int(max(1, min(NC, budget // max(per_plane, 1))))
    if NC > 1:
        # Keep >= 2 grid steps: megacore sharding (v7x) + double-buffered DMA overlap.
        tc = min(tc, max(1, (NC + 1) // 2))

    # Pad the plane count so tc divides it (uniform blocks, no ragged tail).
    NC_pad = _roundup(NC, tc)
    if NC_pad != NC:
        xf = jnp.pad(xf, ((0, NC_pad - NC), (0, 0), (0, 0)))

    grid = (NC_pad // tc,)
    out = pl.pallas_call(
        _blur_kernel,
        out_shape=jax.ShapeDtypeStruct((NC_pad, H, W), out_dtype),
        grid=grid,
        in_specs=[
            pl.BlockSpec((tc, H, W), lambda i: (i, 0, 0)),
            pl.BlockSpec((H, H), lambda i: (0, 0)),       # band matrices stay resident
            pl.BlockSpec((W, W), lambda i: (0, 0)),
        ],
        out_specs=pl.BlockSpec((tc, H, W), lambda i: (i, 0, 0)),
        compiler_params=pltpu.CompilerParams(
            dimension_semantics=("parallel",),
            vmem_limit_bytes=vmem_limit,
        ),
    )(xf, jnp.asarray(bh), jnp.asarray(bwt))

    return out[:NC].reshape(N, C, H, W)


def _reference(x: jax.Array, truncate: int = 4, sigma: float = 1.5) -> jax.Array:
    """Pure-JAX reference (depthwise conv via lax.conv_general_dilated, zero padding)."""
    size = 2 * int(truncate * sigma + 0.5) + 1
    pad = (size - 1) // 2
    C = x.shape[1]
    w = jnp.asarray(fspecial_gaussian(size, sigma))
    w = jnp.broadcast_to(w[None, None], (C, 1, size, size))   # (O=C, I/g=1, kH, kW)
    return jax.lax.conv_general_dilated(
        x.astype(jnp.float32), w,
        window_strides=(1, 1), padding=[(pad, pad), (pad, pad)],
        feature_group_count=C,
        dimension_numbers=("NCHW", "OIHW", "NCHW"),
        precision=jax.lax.Precision.HIGHEST,
    )


if __name__ == "__main__":
    key = jax.random.PRNGKey(0)
    x = jax.random.normal(key, (2, 4, 16, 16), dtype=jnp.float32)   # NCHW

    y = jax.block_until_ready(gaussian_blur_conv(x))
    y_ref = jax.block_until_ready(_reference(x))

    np.testing.assert_allclose(np.asarray(y, dtype=np.float32), np.asarray(y_ref),
                               rtol=2e-3, atol=2e-3)
    print("KERNEL_OK")
</pallas_src>

<mosaic_0001>
module attributes {stable_mosaic.version = 11 : i64} {
  func.func @_blur_kernel(%arg0: i32, %arg1: memref<4x16x16xf32, #tpu.memory_space<vmem>>, %arg2: memref<16x16xf32, #tpu.memory_space<vmem>>, %arg3: memref<16x16xf32, #tpu.memory_space<vmem>>, %arg4: memref<4x16x16xf32, #tpu.memory_space<vmem>>) attributes {dimension_semantics = [#tpu.dimension_semantics<parallel>], iteration_bounds = array<i64: 2>, scalar_prefetch = 0 : i64, scratch_operands = 0 : i64, tpu.core_type = #tpu.core_type<tc>, window_params = [{transform_indices = @transform_0, window_bounds = array<i64: 4, 16, 16>}, {pipeline_mode = #tpu.pipeline_mode<synchronous>, transform_indices = @transform_1, window_bounds = array<i64: 16, 16>}, {pipeline_mode = #tpu.pipeline_mode<synchronous>, transform_indices = @transform_2, window_bounds = array<i64: 16, 16>}, {transform_indices = @transform_3, window_bounds = array<i64: 4, 16, 16>}]} {
    %c0 = arith.constant 0 : index
    %c0_0 = arith.constant 0 : index
    %c0_1 = arith.constant 0 : index
    %0 = vector.load %arg1[%c0, %c0_0, %c0_1] : memref<4x16x16xf32, #tpu.memory_space<vmem>>, vector<4x16x16xf32>
    %c0_2 = arith.constant 0 : index
    %c0_3 = arith.constant 0 : index
    %1 = vector.load %arg3[%c0_2, %c0_3] : memref<16x16xf32, #tpu.memory_space<vmem>>, vector<16x16xf32>
    %2 = vector.shape_cast %1 : vector<16x16xf32> to vector<1x16x16xf32>
    %3 = vector.broadcast %2 : vector<1x16x16xf32> to vector<4x16x16xf32>
    %c0_4 = arith.constant 0 : index
    %c0_5 = arith.constant 0 : index
    %4 = vector.load %arg2[%c0_4, %c0_5] : memref<16x16xf32, #tpu.memory_space<vmem>>, vector<16x16xf32>
    %5 = vector.shape_cast %4 : vector<16x16xf32> to vector<1x16x16xf32>
    %6 = vector.broadcast %5 : vector<1x16x16xf32> to vector<4x16x16xf32>
    "tpu.trace_start"() <{level = 10 : i32, message = "thw,twv->thv"}> : () -> ()
    %cst = arith.constant dense<0.000000e+00> : vector<4x16x16xf32>
    %7 = tpu.matmul %0, %3, %cst {dimension_numbers = #tpu.dot_dimension_numbers<[2], [1], [1], [2], [0, 0, 0, 1, 1, 2], [0], [0]>, precision = #tpu.contract_precision<fp32>} : vector<4x16x16xf32>, vector<4x16x16xf32>, vector<4x16x16xf32> -> vector<4x16x16xf32>
    "tpu.trace_stop"() : () -> ()
    "tpu.trace_start"() <{level = 10 : i32, message = "thk,tkw->thw"}> : () -> ()
    %cst_6 = arith.constant dense<0.000000e+00> : vector<4x16x16xf32>
    %8 = tpu.matmul %6, %7, %cst_6 {dimension_numbers = #tpu.dot_dimension_numbers<[2], [1], [1], [2], [0, 0, 0, 1, 1, 2], [0], [0]>, precision = #tpu.contract_precision<fp32>} : vector<4x16x16xf32>, vector<4x16x16xf32>, vector<4x16x16xf32> -> vector<4x16x16xf32>
    "tpu.trace_stop"() : () -> ()
    %c0_7 = arith.constant 0 : index
    %c0_8 = arith.constant 0 : index
    %c0_9 = arith.constant 0 : index
    %9 = vector.load %arg4[%c0_7, %c0_8, %c0_9] : memref<4x16x16xf32, #tpu.memory_space<vmem>>, vector<4x16x16xf32>
    tpu.vector_store %arg4[%c0_7, %c0_8, %c0_9], %8 {strides = array<i32>} : memref<4x16x16xf32, #tpu.memory_space<vmem>>, vector<4x16x16xf32>,
    return
  }
  func.func @transform_0(%arg0: i32) -> (i32, i32, i32) {
    %c0_i32 = arith.constant 0 : i32
    %c0_i32_0 = arith.constant 0 : i32
    %c0_i32_1 = arith.constant 0 : i32
    return %arg0, %c0_i32, %c0_i32_0 : i32, i32, i32
  }
  func.func @transform_1(%arg0: i32) -> (i32, i32) {
    %c0_i32 = arith.constant 0 : i32
    %c0_i32_0 = arith.constant 0 : i32
    %c0_i32_1 = arith.constant 0 : i32
    return %c0_i32, %c0_i32_0 : i32, i32
  }
  func.func @transform_2(%arg0: i32) -> (i32, i32) {
    %c0_i32 = arith.constant 0 : i32
    %c0_i32_0 = arith.constant 0 : i32
    %c0_i32_1 = arith.constant 0 : i32
    return %c0_i32, %c0_i32_0 : i32, i32
  }
  func.func @transform_3(%arg0: i32) -> (i32, i32, i32) {
    %c0_i32 = arith.constant 0 : i32
    %c0_i32_0 = arith.constant 0 : i32
    %c0_i32_1 = arith.constant 0 : i32
    return %arg0, %c0_i32, %c0_i32_0 : i32, i32, i32
  }
}

</mosaic_0001>

<bundles_post_ra>
// kernel: tpu_custom_call.1
= control target key start
LH: loop header
LB: loop body
LE: loop exit
PB: predicated region body
PF: predicated region fallthrough
CT: control target
= control target key end

     0   :  { %8 = vsyncpa [#allocation3], 0  ;;  %s5750_s0 = inlined_call_operand.hbm [shape: f32[8,16,16], index: 0, kind: input, shape index: {}]   ;;  %s5751_s1 = inlined_call_operand.hbm [shape: f32[16,16], index: 1, kind: input, shape index: {}]   ;;  %s5752_s2 = inlined_call_operand.hbm [shape: f32[16,16], index: 2, kind: input, shape index: {}]   ;;  %s5753_s3 = inlined_call_operand.hbm [shape: f32[8,16,16], index: 3, kind: output, shape index: {}]  }
   0x1   :  { %10 = vsyncpa [#allocation3 + $0x1], 0 }
   0x2   :  { %11 = vsyncpa [#allocation6], 0 }
   0x3   :  { %12 = vsyncpa [#allocation4], 0 }
   0x4   :  { %14 = vsyncpa [#allocation4 + $0x1], 0  ;;  %s5196_s12 = smov 0   ;;  %s5198_s13 = smov 0  }
   0x5   :  { %s5200_s14 = smov 0   ;;  %s5202_s15 = smov 0  }
   0x6 LB: > { %s5217_s16 = sadd.s32 4294967295, %s5166_s15   ;;  %s4395_s17 = sadd.s32 4294967294, %s5166_s15   ;;  %s5166_s15 = sphi %s5202_s15, %s5774_s15   ;;  %s5162_s14 = sphi %s5200_s14, %s5773_s14   ;;  %s5158_s13 = sphi %s5198_s13, %s5772_s13   ;;  %s5154_s12 = sphi %s5196_s12, %s5771_s12  }
   0x7   : > { %p40_p0 = scmp.ne.s32.totalorder %s5158_s13, %s5154_s12  ;;  %p5754_p1 = scmp.eq.s32.totalorder %s5217_s16, 0 }
   0x8   : > { %p106_p2 = scmp.eq.s32.totalorder %s5217_s16, 1  ;;  %p112_p3 = scmp.eq.s32.totalorder %s4395_s17, 1 }
   0x9   : > { %p5226_p4 = por %p5754_p1, %p40_p0  ;;  %p4396_p5 = scmp.ge.s32.totalorder %s5166_s15, 1 }
   0xa   : > { %p5231_p6 = por %p112_p3, %p40_p0  ;;  %p119_p7 = scmp.lt.s32.totalorder %s5166_s15, 3 }
   0xb   : > { %s5758_s18 = scalar_select %p5226_p4, 1, 0 }
   0xc   : > { %s5759_s19 = scalar_select %p5231_p6, 1, 0 }
   0xd   : > { %p5236_p8 = pnand %p4396_p5, %p119_p7  ;;  %s5168_s21 = smov [#allocation5]  }
   0xe   : > { %s131_s22 = sshll.u32 %s5168_s21, 4  ;;  %s5169_s24 = smov [#allocation7]   ;;  %s132_s22 = int_to_ptr.vmem [resolvable:$true] %s131_s22 }
   0xf   : > { %s5760_s20 = scalar_select %p5236_p8, 1, 0 }
  0x10   : > { %p4959_p9 = pneg %p5236_p8  ;;  %s144_s25 = sshll.u32 %s5169_s24, 4  ;;  %s145_s25 = int_to_ptr.vmem [resolvable:$true] %s144_s25 }
  0x11   : > { %s5029_s26 = scalar_lea.vmem %s132_s22, 256  ;;  %p5037_p5 = scmp.lt.s32.totalorder %s132_s22, %s132_s22 }
  0x12   : > { %p5245_p11 = pnand %p4959_p9, %p5754_p1  ;;  %p5030_p13 = scmp.ne.s32.totalorder %s132_s22, %s5029_s26 }
  0x13   : > { %p5038_p7 = scmp.lt.s32.totalorder %s5029_s26, %s5029_s26 }
  0x14   : > { %p5020_p12 = pneg %p5245_p11 }
  0x15   : > { %p5039_p10 = por %p5038_p7, %p5037_p5 }
  0x16   : > { %p5032_p0 = pnand %p5030_p13, %p5020_p12 }
  0x18   : > { %p5033_p3 = pneg %p5032_p0 }
  0x1a   : > { %p5040_p9 = pnand %p5039_p10, %p5033_p3 }
  0x1c   : > { %5043 = shalt.err (!%p5040_p9)
}
  0x1d   : > { %s5170_s27 = smov 128   ;;  %s5171_s28 = smov 8  }
  0x1e   : > { %4962 = dma.hbm_to_vmem [thread:$0]  (!%p5245_p11), %s5751_s1, 256, %s132_s22, [#allocation6], %s5170_s27, %s5170_s27, %s5171_s28  }
  0x1f   : > { %s5055_s4 = scalar_lea.vmem %s145_s25, 256  ;;  %p5063_p10 = scmp.lt.s32.totalorder %s145_s25, %s145_s25 }
  0x20   : > { %p5056_p13 = scmp.ne.s32.totalorder %s145_s25, %s5055_s4  ;;  %p5064_p3 = scmp.lt.s32.totalorder %s5055_s4, %s5055_s4 }
  0x22   : > { %p5058_p0 = pnand %p5056_p13, %p5020_p12  ;;  %p5065_p7 = por %p5064_p3, %p5063_p10 }
  0x24   : > { %p5059_p5 = pneg %p5058_p0 }
  0x26   : > { %p5066_p9 = pnand %p5065_p7, %p5059_p5 }
  0x28   : > { %5069 = shalt.err (!%p5066_p9)
}
  0x29   : > { %4965 = dma.hbm_to_vmem [thread:$0]  (!%p5245_p11), %s5752_s2, 256, %s145_s25, [#allocation6], %s5170_s27, %s5170_s27, %s5171_s28  }
  0x2a   : > { %s5274_s7 = sadd.s32 1, %s5166_s15   ;;  %s27_s8 = sadd.s32 1, %s5162_s14 }
  0x2b   : > { %s24_s9 = ssub.s32 %s5166_s15, %s5274_s7  ;;  %p34_p12 = scmp.ne.s32.totalorder %s5162_s14, %s5158_s13 }
  0x2c   : > { %p25_p13 = scmp.eq.s32.totalorder %s24_s9, 0  ;;  %p35_p0 = scmp.eq.s32.totalorder %s5166_s15, 0 }
  0x2d   : > { %p5284_p5 = por %p106_p2, %p34_p12  ;;  %p4976_p10 = scmp.lt.s32.totalorder %s5166_s15, 2 }
  0x2e   : > { %s5290_s11 = scalar_select %p25_p13, %s5162_s14, %s27_s8  }
  0x2f   : > { %s5762_s10 = scalar_select %p5284_p5, 1, 0 }
  0x30   : > { %p36_p3 = por %p35_p0, %p34_p12  ;;  %s158_s17 = sand.u32 1, %s5162_s14  }
  0x31   : > { %s4400_s21 = sshll.u32 %s158_s17, 6  ;;  %s4416_s22 = sshll.u32 %s5166_s15, 10 }
  0x32   : > { %s5297_s25 = scalar_lea.hbm %s5750_s0, %s4416_s22  ;;  %s162_s26 = scalar_lea.vmem [#allocation2], %s4400_s21 }
  0x33   : > { %s170_s29 = sshll.u32 %s162_s26, 4  ;;  %p5301_p2 = pnand %p4976_p10, %p36_p3  ;;  %s5299_s29 = int_to_ptr.vmem [resolvable:$true] %s170_s29 }
  0x34   : > { %s5305_s4 = scalar_lea.sflag [#allocation3], %s158_s17  ;;  %s5070_s5 = scalar_lea.hbm %s5297_s25, 1024 }
  0x35   : > { %p5071_p11 = scmp.ne.s32.totalorder %s5297_s25, %s5070_s5  ;;  %p5072_p7 = pneg %p5301_p2 }
  0x36   : > { %s5075_s9 = scalar_lea.hbm %s5750_s0, 2048  ;;  %p5076_p13 = scmp.lt.s32.totalorder %s5297_s25, %s5750_s0 }
  0x37   : > { %p5073_p9 = pnand %p5072_p7, %p5071_p11  ;;  %p5077_p0 = scmp.lt.s32.totalorder %s5075_s9, %s5070_s5 }
  0x39   : > { %p5074_p12 = pneg %p5073_p9  ;;  %p5078_p10 = por %p5077_p0, %p5076_p13 }
  0x3b   : > { %p5079_p3 = pnand %p5078_p10, %p5074_p12 }
  0x3d   : > { %5082 = shalt.err (!%p5079_p3)
}
  0x3e   : > { %s5083_s17 = scalar_lea.vmem %s5299_s29, 1024  ;;  %s5172_s23 = smov [#allocation2]  }
  0x3f   : > { %p5084_p1 = scmp.ne.s32.totalorder %s5299_s29, %s5083_s17  ;;  %s5088_s24 = sshll.u32 %s5172_s23, 4  ;;  %s5089_s24 = int_to_ptr.vmem [resolvable:$false] %s5088_s24 }
  0x40   : > { %s5090_s26 = scalar_lea.vmem %s5089_s24, 2048  ;;  %p5091_p9 = scmp.lt.s32.totalorder %s5299_s29, %s5089_s24 }
  0x41   : > { %p5086_p6 = pnand %p5084_p1, %p5072_p7  ;;  %p5092_p5 = scmp.lt.s32.totalorder %s5090_s26, %s5083_s17 }
  0x43   : > { %p5087_p11 = pneg %p5086_p6  ;;  %p5093_p4 = por %p5092_p5, %p5091_p9 }
  0x45   : > { %p5094_p8 = pnand %p5093_p4, %p5087_p11 }
  0x47   : > { %5097 = shalt.err (!%p5094_p8)
}
  0x48   : > { %4969 = dma.hbm_to_vmem [thread:$0]  (!%p5301_p2), %s5297_s25, 1024, %s5299_s29, %s5305_s4, %s5170_s27, %s5170_s27, %s5171_s28  }
  0x49   : > { %p5764_p1 = scmp.ne.s32.totalorder %s5760_s20, 0 }
  0x4a   : > { %s5332_s5 = sand.u32 (!%p5764_p1), 1, %s5158_s13   ;;  %p5765_p4 = scmp.ne.s32.totalorder (!%p5764_p1), %s5758_s18, 0 }
  0x4b   : > { %182 = sbr.rel (%p5764_p1) target bundleno = 594 (0x252), region = 32  ;;  %s4405_s6 = sshll.u32 (!%p5764_p1), %s5332_s5, 6 }
  0x4c   : > { %s185_s8 = scalar_lea.sflag (!%p5764_p1), [#allocation3], %s5332_s5  ;;  %s5338_s30 = scalar_lea.vmem (!%p5764_p1), [#allocation2], %s4405_s6 }
  0x50   : > { %5141 = dma.done.wait (%p5765_p4), %s185_s8, 1024  }
  0x51   : > { %5143 = vsyncadd (%p5765_p4), %s185_s8, 4294966272  ;;  %p5766_p6 = scmp.eq.s32.totalorder %s5217_s16, 0 }
  0x53   : > { %5145 = dma.done.wait (%p5766_p6), [#allocation6], 512   ;;  %p5767_p8 = pmov %p5766_p6 }
  0x54   : > { %vm233_vm0 = vcmask 130048   ;;  %v230_v0 = vld [vmem:[#allocation7 + $0x8] sm:$0xff]  ;;  %v229_v1 = vld [vmem:[#allocation7] sm:$0xff]  ;;  %v221_v2 = vld [vmem:[%s5338_s30] sm:$0xff]  ;;  %s5682_s18 = scalar_lea.vmem [#allocation8], %s4405_s6  ;;  %s4418_s20 = sshll.u32 %s5217_s16, 10 }
  0x55   : > { %5147 = vsyncadd (%p5767_p8), [#allocation6], 4294966784  ;;  %v5349_v3 = vand.u32 4294901760, %v230_v0  ;;  %v5351_v4 = vand.u32 4294901760, %v229_v1  ;;  %v235_v5 = vsel %vm233_vm0, %v221_v2, 0  ;;  %v222_v6 = vld [vmem:[%s5338_s30 + $0x8] sm:$0xff]  ;;  %s5701_s29 = scalar_lea.hbm %s5753_s3, %s4418_s20 }
  0x56   : > { %v5355_v7 = vand.u32 4294901760, %v235_v5  ;;  %v238_v8 = vsel %vm233_vm0, %v222_v6, 0  ;;  %v223_v12 = vld [vmem:[%s5338_s30 + $0x10] sm:$0xff]  ;;  %v224_v14 = vld [vmem:[%s5338_s30 + $0x18] sm:$0xff]  ;;  %v225_v37 = vld [vmem:[%s5338_s30 + $0x20] sm:$0xff]  ;;  %s4303_s27 = sshll.u32 %s5682_s18, 4  ;;  %s5703_s27 = int_to_ptr.vmem [resolvable:$true] %s4303_s27 }
  0x57   : > { %4611 = vmatprep.subr.mxu0 %v5349_v3  ;;  %v5360_v9 = vsub.f32 %v230_v0, %v5349_v3  ;;  %v5362_v10 = vand.u32 4294901760, %v238_v8  ;;  %v5365_v11 = vsub.f32 %v229_v1, %v5351_v4  ;;  %v743_v19 = vsel %vm233_vm0, %v223_v12, 0  ;;  %v226_v39 = vld [vmem:[%s5338_s30 + $0x28] sm:$0xff]  ;;  %v227_v51 = vld [vmem:[%s5338_s30 + $0x30] sm:$0xff]  ;;  %v228_v53 = vld [vmem:[%s5338_s30 + $0x38] sm:$0xff]  ;;  %s4289_s16 = scalar_lea.sflag [#allocation4], %s5332_s5 }
  0x58   : > { %4612 = vmatpush3.msra.mxu0 %v5349_v3  ;;  %v308_v13 = vsub.f32 %v235_v5, %v5355_v7  ;;  %4622 = vmatprep.mubr.f32.mxu1 %v5355_v7  ;;  %v746_v23 = vsel %vm233_vm0, %v224_v14, 0  ;;  %v5392_v28 = vand.u32 4294901760, %v743_v19  ;;  %v1251_v40 = vsel %vm233_vm0, %v225_v37, 0  ;;  %v231_v6 = vld [vmem:[#allocation5] sm:$0xff]  ;;  %s5098_s4 = scalar_lea.vmem %s5703_s27, 1024  ;;  %p5768_p2 = scmp.ne.s32.totalorder %s5762_s10, 0 }
  0x59   : > { %4613 = vmatprep.subr.mxu0 %v5351_v4  ;;  %v5374_v15 = vand.u32 4294901760, %v5360_v9  ;;  %v318_v16 = vsub.f32 %v238_v8, %v5362_v10  ;;  %v5378_v17 = vand.u32 4294901760, %v5365_v11  ;;  %v5394_v30 = vand.u32 4294901760, %v746_v23  ;;  %p5099_p5 = scmp.ne.s32.totalorder %s5703_s27, %s5098_s4  ;;  %s5173_s9 = smov [#allocation8]  }
  0x5a   : > { %4614 = vmatpush3.msra.mxu0 %v5351_v4  ;;  %v309_v18 = vand.u32 4294901760, %v308_v13  ;;  %v5400_v32 = vsub.f32 %v743_v19, %v5392_v28  ;;  %v1254_v42 = vsel %vm233_vm0, %v226_v39, 0  ;;  %v5437_v44 = vand.u32 4294901760, %v1251_v40  ;;  %s5102_s21 = sshll.u32 %s5173_s9, 4  ;;  %s5103_s21 = int_to_ptr.vmem [resolvable:$false] %s5102_s21 }
  0x5b   : > { %v359_v20 = vsub.f32 %v5360_v9, %v5374_v15  ;;  %v319_v21 = vand.u32 4294901760, %v318_v16  ;;  %v366_v22 = vsub.f32 %v5365_v11, %v5378_v17  ;;  %4625 = vmatprep.subr.mxu0 %v5360_v9  ;;  %v5405_v33 = vsub.f32 %v746_v23, %v5394_v30  ;;  %p5100_p7 = pnand %p5099_p5, %p5768_p2  ;;  %s5104_s22 = scalar_lea.vmem %s5103_s21, 2048 }
  0x5c   : > { %v310_v24 = vsub.f32 %v308_v13, %v309_v18  ;;  %v817_v34 = vand.u32 4294901760, %v5400_v32  ;;  %v5441_v45 = vand.u32 4294901760, %v1254_v42  ;;  %v5448_v46 = vsub.f32 %v1251_v40, %v5437_v44  ;;  %p5105_p13 = scmp.lt.s32.totalorder %s5703_s27, %s5103_s21  ;;  %p5106_p0 = scmp.lt.s32.totalorder %s5104_s22, %s5098_s4 }
  0x5d   : > { %v5388_v25 = vand.u32 4294901760, %v359_v20  ;;  %v320_v26 = vsub.f32 %v318_v16, %v319_v21  ;;  %v5390_v27 = vand.u32 4294901760, %v366_v22  ;;  %v827_v35 = vand.u32 4294901760, %v5405_v33  ;;  %p5101_p12 = pneg %p5100_p7 }
  0x5e   : > { %v311_v29 = vand.u32 4294901760, %v310_v24  ;;  %v818_v36 = vsub.f32 %v5400_v32, %v817_v34  ;;  %v5453_v47 = vsub.f32 %v1254_v42, %v5441_v45  ;;  %v1325_v48 = vand.u32 4294901760, %v5448_v46  ;;  %p5107_p10 = por %p5106_p0, %p5105_p13 }
  0x5f   : > { %4618 = vmatprep.subr.mxu1 %v5388_v25  ;;  %v321_v31 = vand.u32 4294901760, %v320_v26  ;;  %v828_v38 = vsub.f32 %v5405_v33, %v827_v35  ;;  %v1759_v54 = vsel %vm233_vm0, %v227_v51, 0  ;;  %v1762_v56 = vsel %vm233_vm0, %v228_v53, 0 }
  0x60   : > { %4615 = vmatprep.mubr.f32.mxu0 %v311_v29  ;;  %4619 = vmatpush3.msra.mxu1 %v5388_v25  ;;  %v819_v41 = vand.u32 4294901760, %v818_v36  ;;  %v1335_v49 = vand.u32 4294901760, %v5453_v47  ;;  %v1326_v50 = vsub.f32 %v5448_v46, %v1325_v48  ;;  %v5487_v58 = vand.u32 4294901760, %v1759_v54  ;;  %p5108_p3 = pnand %p5107_p10, %p5101_p12 }
  0x61   : > { %4616 = vmatmul.mubr.f32.vlgmr.msra.gmra.mxu0 %v321_v31  ;;  %4620 = vmatprep.subr.mxu1 %v5390_v27  ;;  %v829_v43 = vand.u32 4294901760, %v828_v38  ;;  %v5491_v59 = vand.u32 4294901760, %v1762_v56 }
  0x62   : > { %4621 = vmatpush3.msra.mxu1 %v5390_v27  ;;  %4626 = vmatpush3.msra.mxu0 %v5360_v9  ;;  %v1336_v52 = vsub.f32 %v5453_v47, %v1335_v49  ;;  %v1327_v55 = vand.u32 4294901760, %v1326_v50  ;;  %v1832_v60 = vsub.f32 %v1759_v54, %v5487_v58 }
  0x63   : > { %4623 = vmatmul.mubr.f32.vlgmr.msra.gmra.mxu1 %v5362_v10  ;;  %4627 = vmatprep.subr.mxu0 %v5365_v11  ;;  %v1842_v61 = vsub.f32 %v1762_v56, %v5491_v59 }
  0x64   : > { %4632 = vmatprep.subr.mxu1 %v5349_v3  ;;  %4628 = vmatpush3.msra.mxu0 %v5365_v11  ;;  %v1337_v57 = vand.u32 4294901760, %v1336_v52  ;;  %v1833_v62 = vand.u32 4294901760, %v1832_v60 }
  0x65   : > { %4629 = vmatprep.mubr.f32.mxu0 %v308_v13  ;;  %4633 = vmatpush3.msra.mxu1 %v5349_v3  ;;  %v1843_v63 = vand.u32 4294901760, %v1842_v61 }
  0x66   : > { %4630 = vmatmul.mubr.f32.vlgmr.msra.gmra.mxu0 %v318_v16  ;;  %4634 = vmatprep.subr.mxu1 %v5351_v4  ;;  %v1834_v0 = vsub.f32 %v1832_v60, %v1833_v62 }
  0x67   : > { %4639 = vmatprep.subr.mxu0 %v5374_v15  ;;  %4635 = vmatpush3.msra.mxu1 %v5351_v4  ;;  %v1844_v1 = vsub.f32 %v1842_v61, %v1843_v63 }
  0x68   : > { %4636 = vmatprep.mubr.f32.mxu1 %v309_v18  ;;  %4640 = vmatpush3.msra.mxu0 %v5374_v15  ;;  %v1835_v2 = vand.u32 4294901760, %v1834_v0 }
  0x69   : > { %4637 = vmatmul.mubr.f32.vlgmr.msra.gmra.mxu1 %v319_v21  ;;  %4641 = vmatprep.subr.mxu0 %v5378_v17  ;;  %v1845_v5 = vand.u32 4294901760, %v1844_v1 }
  0x6a   : > { %4646 = vmatprep.subr.mxu1 %v5349_v3  ;;  %4642 = vmatpush3.msra.mxu0 %v5378_v17 }
  0x6b   : > { %4643 = vmatprep.mubr.f32.mxu0 %v5355_v7  ;;  %4647 = vmatpush3.msra.mxu1 %v5349_v3 }
  0x6c   : > { %4644 = vmatmul.mubr.f32.vlgmr.msra.gmra.mxu0 %v5362_v10  ;;  %4648 = vmatprep.subr.mxu1 %v5351_v4 }
  0x6d   : > { %4653 = vmatprep.subr.mxu0 %v5349_v3  ;;  %4649 = vmatpush3.msra.mxu1 %v5351_v4 }
  0x6e   : > { %4650 = vmatprep.mubr.f32.mxu1 %v5355_v7  ;;  %4654 = vmatpush3.msra.mxu0 %v5349_v3  ;;  %v2267_v7 = vsel %vm233_vm0, %v231_v6, 0 }
  0x6f   : > { %4651 = vmatmul.mubr.f32.vlgmr.msra.gmra.mxu1 %v5362_v10  ;;  %4655 = vmatprep.subr.mxu0 %v5351_v4  ;;  %v5553_v8 = vand.u32 4294901760, %v2267_v7 }
  0x70   : > { %4660 = vmatprep.subr.mxu1 %v5388_v25  ;;  %4656 = vmatpush3.msra.mxu0 %v5351_v4 }
  0x71   : > { %4657 = vmatprep.mubr.f32.mxu0 %v819_v41  ;;  %4661 = vmatpush3.msra.mxu1 %v5388_v25 }
  0x72   : > { %4658 = vmatmul.mubr.f32.vlgmr.msra.gmra.mxu0 %v829_v43  ;;  %4662 = vmatprep.subr.mxu1 %v5390_v27 }
  0x73   : > { %4667 = vmatprep.subr.mxu0 %v5360_v9  ;;  %4663 = vmatpush3.msra.mxu1 %v5390_v27 }
  0x74   : > { %4664 = vmatprep.mubr.f32.mxu1 %v5392_v28  ;;  %4668 = vmatpush3.msra.mxu0 %v5360_v9 }
  0x75   : > { %4665 = vmatmul.mubr.f32.vlgmr.msra.gmra.mxu1 %v5394_v30  ;;  %4669 = vmatprep.subr.mxu0 %v5365_v11 }
  0x76   : > { %4674 = vmatprep.subr.mxu1 %v5349_v3  ;;  %4670 = vmatpush3.msra.mxu0 %v5365_v11 }
  0x77   : > { %4671 = vmatprep.mubr.f32.mxu0 %v5400_v32  ;;  %4675 = vmatpush3.msra.mxu1 %v5349_v3 }
  0x78   : > { %4672 = vmatmul.mubr.f32.vlgmr.msra.gmra.mxu0 %v5405_v33  ;;  %4676 = vmatprep.subr.mxu1 %v5351_v4 }
  0x79   : > { %4681 = vmatprep.subr.mxu0 %v5374_v15  ;;  %4677 = vmatpush3.msra.mxu1 %v5351_v4 }
  0x7a   : > { %4678 = vmatprep.mubr.f32.mxu1 %v817_v34  ;;  %4682 = vmatpush3.msra.mxu0 %v5374_v15 }
  0x7b   : > { %4679 = vmatmul.mubr.f32.vlgmr.msra.gmra.mxu1 %v827_v35  ;;  %4683 = vmatprep.subr.mxu0 %v5378_v17 }
  0x7c   : > { %4688 = vmatprep.subr.mxu1 %v5349_v3  ;;  %4684 = vmatpush3.msra.mxu0 %v5378_v17 }
  0x7d   : > { %4685 = vmatprep.mubr.f32.mxu0 %v5392_v28  ;;  %4689 = vmatpush3.msra.mxu1 %v5349_v3 }
  0x7e   : > { %4686 = vmatmul.mubr.f32.vlgmr.msra.gmra.mxu0 %v5394_v30  ;;  %4690 = vmatprep.subr.mxu1 %v5351_v4 }
  0x7f   : > { %4695 = vmatprep.subr.mxu0 %v5349_v3  ;;  %4691 = vmatpush3.msra.mxu1 %v5351_v4 }
  0x80   : > { %4692 = vmatprep.mubr.f32.mxu1 %v5392_v28  ;;  %4696 = vmatpush3.msra.mxu0 %v5349_v3 }
  0x81   : > { %4693 = vmatmul.mubr.f32.vlgmr.msra.gmra.mxu1 %v5394_v30  ;;  %4697 = vmatprep.subr.mxu0 %v5351_v4 }
  0x82   : > { %4702 = vmatprep.subr.mxu1 %v5388_v25  ;;  %4698 = vmatpush3.msra.mxu0 %v5351_v4 }
  0x83   : > { %4699 = vmatprep.mubr.f32.mxu0 %v1327_v55  ;;  %4703 = vmatpush3.msra.mxu1 %v5388_v25 }
  0x84   : > { %4700 = vmatmul.mubr.f32.vlgmr.msra.gmra.mxu0 %v1337_v57  ;;  %4704 = vmatprep.subr.mxu1 %v5390_v27 }
  0x85   : > { %4709 = vmatprep.subr.mxu0 %v5360_v9  ;;  %4705 = vmatpush3.msra.mxu1 %v5390_v27 }
  0x86   : > { %4706 = vmatprep.mubr.f32.mxu1 %v5437_v44  ;;  %4710 = vmatpush3.msra.mxu0 %v5360_v9 }
  0x87   : > { %4707 = vmatmul.mubr.f32.vlgmr.msra.gmra.mxu1 %v5441_v45  ;;  %4711 = vmatprep.subr.mxu0 %v5365_v11 }
  0x88   : > { %4716 = vmatprep.subr.mxu1 %v5349_v3  ;;  %4712 = vmatpush3.msra.mxu0 %v5365_v11 }
  0x89   : > { %4713 = vmatprep.mubr.f32.mxu0 %v5448_v46  ;;  %4717 = vmatpush3.msra.mxu1 %v5349_v3 }
  0x8a   : > { %4714 = vmatmul.mubr.f32.vlgmr.msra.gmra.mxu0 %v5453_v47  ;;  %4718 = vmatprep.subr.mxu1 %v5351_v4 }
  0x8b   : > { %4723 = vmatprep.subr.mxu0 %v5374_v15  ;;  %4719 = vmatpush3.msra.mxu1 %v5351_v4 }
  0x8c   : > { %4720 = vmatprep.mubr.f32.mxu1 %v1325_v48  ;;  %4724 = vmatpush3.msra.mxu0 %v5374_v15 }
  0x8d   : > { %4721 = vmatmul.mubr.f32.vlgmr.msra.gmra.mxu1 %v1335_v49  ;;  %4725 = vmatprep.subr.mxu0 %v5378_v17 }
  0x8e   : > { %4730 = vmatprep.subr.mxu1 %v5349_v3  ;;  %4726 = vmatpush3.msra.mxu0 %v5378_v17 }
  0x8f   : > { %4727 = vmatprep.mubr.f32.mxu0 %v5437_v44  ;;  %4731 = vmatpush3.msra.mxu1 %v5349_v3 }
  0x90   : > { %4728 = vmatmul.mubr.f32.vlgmr.msra.gmra.mxu0 %v5441_v45  ;;  %4732 = vmatprep.subr.mxu1 %v5351_v4 }
  0x91   : > { %4737 = vmatprep.subr.mxu0 %v5349_v3  ;;  %4733 = vmatpush3.msra.mxu1 %v5351_v4 }
  0x92   : > { %4734 = vmatprep.mubr.f32.mxu1 %v5437_v44  ;;  %4738 = vmatpush3.msra.mxu0 %v5349_v3 }
  0x93   : > { %4735 = vmatmul.mubr.f32.vlgmr.msra.gmra.mxu1 %v5441_v45  ;;  %4739 = vmatprep.subr.mxu0 %v5351_v4 }
  0x94   : > { %4744 = vmatprep.subr.mxu1 %v5388_v25  ;;  %4740 = vmatpush3.msra.mxu0 %v5351_v4 }
  0x95   : > { %4741 = vmatprep.mubr.f32.mxu0 %v1835_v2  ;;  %4745 = vmatpush3.msra.mxu1 %v5388_v25 }
  0x96   : > { %4742 = vmatmul.mubr.f32.vlgmr.msra.gmra.mxu0 %v1845_v5  ;;  %4746 = vmatprep.subr.mxu1 %v5390_v27 }
  0x97   : > { %4751 = vmatprep.subr.mxu0 %v5360_v9  ;;  %4747 = vmatpush3.msra.mxu1 %v5390_v27 }
  0x98   : > { %4748 = vmatprep.mubr.f32.mxu1 %v5487_v58  ;;  %4752 = vmatpush3.msra.mxu0 %v5360_v9  ;;  %v5556_v9 = vsub.f32 %v2267_v7, %v5553_v8 }
  0x99   : > { %4749 = vmatmul.mubr.f32.vlgmr.msra.gmra.mxu1 %v5491_v59  ;;  %4753 = vmatprep.subr.mxu0 %v5365_v11 }
  0x9a   : > { %4758 = vmatprep.subr.mxu1 %v5349_v3  ;;  %4754 = vmatpush3.msra.mxu0 %v5365_v11  ;;  %v232_v11 = vld [vmem:[#allocation5 + $0x8] sm:$0xff] }
  0x9b   : > { %4755 = vmatprep.mubr.f32.mxu0 %v1832_v60  ;;  %4759 = vmatpush3.msra.mxu1 %v5349_v3  ;;  %v2270_v13 = vsel %vm233_vm0, %v232_v11, 0 }
  0x9c   : > { %4756 = vmatmul.mubr.f32.vlgmr.msra.gmra.mxu0 %v1842_v61  ;;  %4760 = vmatprep.subr.mxu1 %v5351_v4 }
  0x9d   : > { %4765 = vmatprep.subr.mxu0 %v5374_v15  ;;  %4761 = vmatpush3.msra.mxu1 %v5351_v4 }
  0x9e   : > { %4762 = vmatprep.mubr.f32.mxu1 %v1833_v62  ;;  %4766 = vmatpush3.msra.mxu0 %v5374_v15 }
  0x9f   : > { %4763 = vmatmul.mubr.f32.vlgmr.msra.gmra.mxu1 %v1843_v63  ;;  %4767 = vmatprep.subr.mxu0 %v5378_v17 }
  0xa0   : > { %4772 = vmatprep.subr.mxu1 %v5349_v3  ;;  %4768 = vmatpush3.msra.mxu0 %v5378_v17  ;;  %v5568_v17 = vand.u32 4294901760, %v2270_v13 }
  0xa1   : > { %4769 = vmatprep.mubr.f32.mxu0 %v5487_v58  ;;  %4773 = vmatpush3.msra.mxu1 %v5349_v3  ;;  %v5560_v3 = vand.u32 4294901760, %v5556_v9 }
  0xa2   : > { %4770 = vmatmul.mubr.f32.vlgmr.msra.gmra.mxu0 %v5491_v59  ;;  %4774 = vmatprep.subr.mxu1 %v5351_v4  ;;  %v5571_v23 = vsub.f32 %v2270_v13, %v5568_v17 }
  0xa3   : > { %4775 = vmatpush3.msra.mxu1 %v5351_v4  ;;  %4776 = vmatprep.mubr.f32.mxu1 %v5487_v58  ;;  %v2342_v4 = vsub.f32 %v5556_v9, %v5560_v3 }
  0xa4   : > { %4777 = vmatmul.mubr.f32.vlgmr.msra.gmra.mxu1 %v5491_v59  ;;  %v5574_v30 = vand.u32 4294901760, %v5571_v23 }
  0xa5   : > { %4790 = vmatprep.mubr.f32.mxu1 %v5553_v8  ;;  %v5564_v10 = vand.u32 4294901760, %v2342_v4 }
  0xa6   : > { %v2352_v36 = vsub.f32 %v5571_v23, %v5574_v30 }
  0xa7   : > { %4783 = vmatprep.mubr.f32.mxu0 %v5564_v10 }
  0xa8   : > { %v5584_v44 = vand.u32 4294901760, %v2352_v36 }
 0x121   : > { %v4617_v12 = vpop.f32.mrf.mxu0 }
 0x123   : > { %v313_v14 = vpop.f32.mrf.mxu0  ;;  %v4624_v15 = vpop.f32.mrf.mxu1 }
 0x124   : > { %v411_v16 = vadd.f32 %v4624_v15, %v4617_v12 }
 0x125   : > { %v404_v18 = vpop.f32.mrf.mxu1 }
 0x126   : > { %v405_v19 = vadd.f32 %v404_v18, %v313_v14  ;;  %v4631_v20 = vpop.f32.mrf.mxu0 }
 0x127   : > { %v494_v21 = vadd.f32 %v4631_v20, %v411_v16 }
 0x128   : > { %v486_v22 = vpop.f32.mrf.mxu0 }
 0x129   : > { %v487_v24 = vadd.f32 %v486_v22, %v405_v19  ;;  %v4638_v25 = vpop.f32.mrf.mxu1 }
 0x12a   : > { %v577_v26 = vadd.f32 %v4638_v25, %v494_v21 }
 0x12b   : > { %v568_v27 = vpop.f32.mrf.mxu1 }
 0x12c   : > { %v569_v28 = vadd.f32 %v568_v27, %v487_v24  ;;  %v4645_v29 = vpop.f32.mrf.mxu0 }
 0x12d   : > { %v660_v31 = vadd.f32 %v4645_v29, %v577_v26 }
 0x12e   : > { %v653_v32 = vpop.f32.mrf.mxu0 }
 0x12f   : > { %v654_v33 = vadd.f32 %v653_v32, %v569_v28  ;;  %v4652_v34 = vpop.f32.mrf.mxu1 }
 0x130   : > { %v739_v35 = vadd.f32 %v4652_v34, %v660_v31 }
 0x131   : > { %v732_v37 = vpop.f32.mrf.mxu1 }
 0x132   : > { %v5578_v38 = vand.u32 4294901760, %v739_v35  ;;  %v733_v39 = vadd.f32 %v732_v37, %v654_v33  ;;  %v4659_v40 = vpop.f32.mrf.mxu0 }
 0x134   : > { %v2389_v41 = vsub.f32 %v739_v35, %v5578_v38  ;;  %v5581_v42 = vand.u32 4294901760, %v733_v39  ;;  %v821_v43 = vpop.f32.mrf.mxu0  ;;  %4779 = vmatprep.subr.mxu0 %v5578_v38 }
 0x135   : > { %v4666_v45 = vpop.f32.mrf.mxu1  ;;  %4780 = vmatpush3.msra.mxu0 %v5578_v38 }
 0x136   : > { %v2396_v46 = vsub.f32 %v733_v39, %v5581_v42  ;;  %v919_v47 = vadd.f32 %v4666_v45, %v4659_v40  ;;  %4781 = vmatprep.subr.mxu0 %v5581_v42  ;;  %v2390_v48 = vand.u32 4294901760, %v2389_v41 }
 0x137   : > { %v912_v49 = vpop.f32.mrf.mxu1  ;;  %4782 = vmatpush3.msra.mxu0 %v5581_v42 }
 0x138   : > { %v913_v50 = vadd.f32 %v912_v49, %v821_v43  ;;  %v4673_v51 = vpop.f32.mrf.mxu0  ;;  %4793 = vmatprep.subr.mxu0 %v2389_v41  ;;  %4784 = vmatmul.mubr.f32.vlgmr.msra.gmra.mxu0 %v5584_v44  ;;  %v2391_v52 = vsub.f32 %v2389_v41, %v2390_v48  ;;  %v2397_v53 = vand.u32 4294901760, %v2396_v46 }
 0x139   : > { %v1002_v54 = vadd.f32 %v4673_v51, %v919_v47  ;;  %4794 = vmatpush3.msra.mxu0 %v2389_v41  ;;  %4797 = vmatprep.mubr.f32.mxu0 %v5556_v9 }
 0x13a   : > { %v994_v55 = vpop.f32.mrf.mxu0  ;;  %4795 = vmatprep.subr.mxu0 %v2396_v46  ;;  %v2392_v56 = vand.u32 4294901760, %v2391_v52  ;;  %v2398_v57 = vsub.f32 %v2396_v46, %v2397_v53 }
 0x13b   : > { %v995_v58 = vadd.f32 %v994_v55, %v913_v50  ;;  %v4680_v59 = vpop.f32.mrf.mxu1  ;;  %4796 = vmatpush3.msra.mxu0 %v2396_v46 }
 0x13c   : > { %v1085_v60 = vadd.f32 %v4680_v59, %v1002_v54  ;;  %4786 = vmatprep.subr.mxu1 %v2392_v56  ;;  %4807 = vmatprep.subr.mxu0 %v2390_v48  ;;  %v2399_v61 = vand.u32 4294901760, %v2398_v57 }
 0x13d   : > { %v1076_v62 = vpop.f32.mrf.mxu1  ;;  %4787 = vmatpush3.msra.mxu1 %v2392_v56  ;;  %4798 = vmatmul.mubr.f32.vlgmr.msra.gmra.mxu0 %v5571_v23 }
 0x13e   : > { %v1077_v63 = vadd.f32 %v1076_v62, %v995_v58  ;;  %v4687_v0 = vpop.f32.mrf.mxu0  ;;  %4808 = vmatpush3.msra.mxu0 %v2390_v48  ;;  %4788 = vmatprep.subr.mxu1 %v2399_v61 }
 0x13f   : > { %v1168_v1 = vadd.f32 %v4687_v0, %v1085_v60  ;;  %4809 = vmatprep.subr.mxu0 %v2397_v53  ;;  %4789 = vmatpush3.msra.mxu1 %v2399_v61 }
 0x140   : > { %v1161_v2 = vpop.f32.mrf.mxu0  ;;  %4810 = vmatpush3.msra.mxu0 %v2397_v53  ;;  %4791 = vmatmul.mubr.f32.vlgmr.msra.gmra.mxu1 %v5568_v17 }
 0x141   : > { %v1162_v5 = vadd.f32 %v1161_v2, %v1077_v63  ;;  %v4694_v6 = vpop.f32.mrf.mxu1  ;;  %4800 = vmatprep.subr.mxu1 %v5578_v38  ;;  %4811 = vmatprep.mubr.f32.mxu0 %v5553_v8 }
 0x142   : > { %v1247_v7 = vadd.f32 %v4694_v6, %v1168_v1  ;;  %4801 = vmatpush3.msra.mxu1 %v5578_v38  ;;  %4812 = vmatmul.mubr.f32.vlgmr.msra.gmra.mxu0 %v5568_v17 }
 0x143   : > { %v1240_v4 = vpop.f32.mrf.mxu1  ;;  %4802 = vmatprep.subr.mxu1 %v5581_v42  ;;  %4804 = vmatprep.mubr.f32.mxu1 %v5560_v3 }
 0x144   : > { %v5600_v11 = vand.u32 4294901760, %v1247_v7  ;;  %v1241_v12 = vadd.f32 %v1240_v4, %v1162_v5  ;;  %v4701_v13 = vpop.f32.mrf.mxu0  ;;  %4803 = vmatpush3.msra.mxu1 %v5581_v42  ;;  %4825 = vmatprep.mubr.f32.mxu0 %v5564_v10 }
 0x145   : > { %4805 = vmatmul.mubr.f32.vlgmr.msra.gmra.mxu1 %v5574_v30  ;;  %4814 = vmatprep.subr.mxu1 %v5578_v38 }
 0x146   : > { %v2891_v14 = vsub.f32 %v1247_v7, %v5600_v11  ;;  %v5607_v15 = vand.u32 4294901760, %v1241_v12  ;;  %v1329_v16 = vpop.f32.mrf.mxu0  ;;  %4821 = vmatprep.subr.mxu0 %v5600_v11  ;;  %4815 = vmatpush3.msra.mxu1 %v5578_v38 }
 0x147   : > { %v4708_v18 = vpop.f32.mrf.mxu1  ;;  %4822 = vmatpush3.msra.mxu0 %v5600_v11  ;;  %4816 = vmatprep.subr.mxu1 %v5581_v42 }
 0x148   : > { %v2898_v19 = vsub.f32 %v1241_v12, %v5607_v15  ;;  %v1427_v20 = vadd.f32 %v4708_v18, %v4701_v13  ;;  %4823 = vmatprep.subr.mxu0 %v5607_v15  ;;  %4817 = vmatpush3.msra.mxu1 %v5581_v42  ;;  %v2892_v21 = vand.u32 4294901760, %v2891_v14 }
 0x149   : > { %v1420_v22 = vpop.f32.mrf.mxu1  ;;  %4824 = vmatpush3.msra.mxu0 %v5607_v15  ;;  %4818 = vmatprep.mubr.f32.mxu1 %v5553_v8 }
 0x14a   : > { %v1421_v24 = vadd.f32 %v1420_v22, %v1329_v16  ;;  %v4715_v25 = vpop.f32.mrf.mxu0  ;;  %4835 = vmatprep.subr.mxu0 %v2891_v14  ;;  %4826 = vmatmul.mubr.f32.vlgmr.msra.gmra.mxu0 %v5584_v44  ;;  %v2893_v26 = vsub.f32 %v2891_v14, %v2892_v21  ;;  %v2899_v27 = vand.u32 4294901760, %v2898_v19 }
 0x14b   : > { %v1510_v28 = vadd.f32 %v4715_v25, %v1427_v20  ;;  %4836 = vmatpush3.msra.mxu0 %v2891_v14  ;;  %4819 = vmatmul.mubr.f32.vlgmr.msra.gmra.mxu1 %v5568_v17 }
 0x14c   : > { %v1502_v29 = vpop.f32.mrf.mxu0  ;;  %4837 = vmatprep.subr.mxu0 %v2898_v19  ;;  %v2894_v31 = vand.u32 4294901760, %v2893_v26  ;;  %4839 = vmatprep.mubr.f32.mxu0 %v5556_v9  ;;  %v2900_v32 = vsub.f32 %v2898_v19, %v2899_v27 }
 0x14d   : > { %v1503_v33 = vadd.f32 %v1502_v29, %v1421_v24  ;;  %v4722_v34 = vpop.f32.mrf.mxu1  ;;  %4838 = vmatpush3.msra.mxu0 %v2898_v19  ;;  %4832 = vmatprep.mubr.f32.mxu1 %v5553_v8 }
 0x14e   : > { %v1593_v35 = vadd.f32 %v4722_v34, %v1510_v28  ;;  %4828 = vmatprep.subr.mxu1 %v2894_v31  ;;  %4849 = vmatprep.subr.mxu0 %v2892_v21  ;;  %v2901_v36 = vand.u32 4294901760, %v2900_v32 }
 0x14f   : > { %v1584_v37 = vpop.f32.mrf.mxu1  ;;  %4829 = vmatpush3.msra.mxu1 %v2894_v31  ;;  %4840 = vmatmul.mubr.f32.vlgmr.msra.gmra.mxu0 %v5571_v23 }
 0x150   : > { %v1585_v38 = vadd.f32 %v1584_v37, %v1503_v33  ;;  %v4729_v39 = vpop.f32.mrf.mxu0  ;;  %4850 = vmatpush3.msra.mxu0 %v2892_v21  ;;  %4830 = vmatprep.subr.mxu1 %v2901_v36 }
 0x151   : > { %v1676_v40 = vadd.f32 %v4729_v39, %v1593_v35  ;;  %4851 = vmatprep.subr.mxu0 %v2899_v27  ;;  %4831 = vmatpush3.msra.mxu1 %v2901_v36 }
 0x152   : > { %v1669_v41 = vpop.f32.mrf.mxu0  ;;  %4852 = vmatpush3.msra.mxu0 %v2899_v27  ;;  %4833 = vmatmul.mubr.f32.vlgmr.msra.gmra.mxu1 %v5568_v17 }
 0x153   : > { %v1670_v42 = vadd.f32 %v1669_v41, %v1585_v38  ;;  %v4736_v43 = vpop.f32.mrf.mxu1  ;;  %4842 = vmatprep.subr.mxu1 %v5600_v11  ;;  %4853 = vmatprep.mubr.f32.mxu0 %v5553_v8 }
 0x154   : > { %v1755_v45 = vadd.f32 %v4736_v43, %v1676_v40  ;;  %4843 = vmatpush3.msra.mxu1 %v5600_v11  ;;  %4854 = vmatmul.mubr.f32.vlgmr.msra.gmra.mxu0 %v5568_v17 }
 0x155   : > { %v1748_v46 = vpop.f32.mrf.mxu1  ;;  %4844 = vmatprep.subr.mxu1 %v5607_v15  ;;  %4846 = vmatprep.mubr.f32.mxu1 %v5560_v3 }
 0x156   : > { %v5630_v47 = vand.u32 4294901760, %v1755_v45  ;;  %v1749_v48 = vadd.f32 %v1748_v46, %v1670_v42  ;;  %v4743_v49 = vpop.f32.mrf.mxu0  ;;  %4845 = vmatpush3.msra.mxu1 %v5607_v15  ;;  %4867 = vmatprep.mubr.f32.mxu0 %v5564_v10 }
 0x157   : > { %4847 = vmatmul.mubr.f32.vlgmr.msra.gmra.mxu1 %v5574_v30  ;;  %4856 = vmatprep.subr.mxu1 %v5600_v11 }
 0x158   : > { %v3393_v50 = vsub.f32 %v1755_v45, %v5630_v47  ;;  %v5637_v51 = vand.u32 4294901760, %v1749_v48  ;;  %v1837_v52 = vpop.f32.mrf.mxu0  ;;  %4863 = vmatprep.subr.mxu0 %v5630_v47  ;;  %4857 = vmatpush3.msra.mxu1 %v5600_v11 }
 0x159   : > { %v4750_v53 = vpop.f32.mrf.mxu1  ;;  %4864 = vmatpush3.msra.mxu0 %v5630_v47  ;;  %4858 = vmatprep.subr.mxu1 %v5607_v15 }
 0x15a   : > { %v3400_v54 = vsub.f32 %v1749_v48, %v5637_v51  ;;  %v1935_v55 = vadd.f32 %v4750_v53, %v4743_v49  ;;  %4865 = vmatprep.subr.mxu0 %v5637_v51  ;;  %4859 = vmatpush3.msra.mxu1 %v5607_v15  ;;  %v3394_v56 = vand.u32 4294901760, %v3393_v50 }
 0x15b   : > { %v1928_v57 = vpop.f32.mrf.mxu1  ;;  %4866 = vmatpush3.msra.mxu0 %v5637_v51  ;;  %4860 = vmatprep.mubr.f32.mxu1 %v5553_v8 }
 0x15c   : > { %v1929_v58 = vadd.f32 %v1928_v57, %v1837_v52  ;;  %v4757_v59 = vpop.f32.mrf.mxu0  ;;  %4877 = vmatprep.subr.mxu0 %v3393_v50  ;;  %4868 = vmatmul.mubr.f32.vlgmr.msra.gmra.mxu0 %v5584_v44  ;;  %v3395_v60 = vsub.f32 %v3393_v50, %v3394_v56  ;;  %v3401_v61 = vand.u32 4294901760, %v3400_v54 }
 0x15d   : > { %v2018_v62 = vadd.f32 %v4757_v59, %v1935_v55  ;;  %4878 = vmatpush3.msra.mxu0 %v3393_v50  ;;  %4861 = vmatmul.mubr.f32.vlgmr.msra.gmra.mxu1 %v5568_v17 }
 0x15e   : > { %v2010_v63 = vpop.f32.mrf.mxu0  ;;  %4879 = vmatprep.subr.mxu0 %v3400_v54  ;;  %v3396_v0 = vand.u32 4294901760, %v3395_v60  ;;  %4881 = vmatprep.mubr.f32.mxu0 %v5556_v9  ;;  %v3402_v1 = vsub.f32 %v3400_v54, %v3401_v61 }
 0x15f   : > { %v2011_v2 = vadd.f32 %v2010_v63, %v1929_v58  ;;  %v4764_v5 = vpop.f32.mrf.mxu1  ;;  %4880 = vmatpush3.msra.mxu0 %v3400_v54  ;;  %4874 = vmatprep.mubr.f32.mxu1 %v5553_v8 }
 0x160   : > { %v2101_v6 = vadd.f32 %v4764_v5, %v2018_v62  ;;  %4870 = vmatprep.subr.mxu1 %v3396_v0  ;;  %4891 = vmatprep.subr.mxu0 %v3394_v56  ;;  %v3403_v7 = vand.u32 4294901760, %v3402_v1 }
 0x161   : > { %v2092_v4 = vpop.f32.mrf.mxu1  ;;  %4871 = vmatpush3.msra.mxu1 %v3396_v0  ;;  %4882 = vmatmul.mubr.f32.vlgmr.msra.gmra.mxu0 %v5571_v23 }
 0x162   : > { %v2093_v11 = vadd.f32 %v2092_v4, %v2011_v2  ;;  %v4771_v12 = vpop.f32.mrf.mxu0  ;;  %4892 = vmatpush3.msra.mxu0 %v3394_v56  ;;  %4872 = vmatprep.subr.mxu1 %v3403_v7 }
 0x163   : > { %v2184_v13 = vadd.f32 %v4771_v12, %v2101_v6  ;;  %4893 = vmatprep.subr.mxu0 %v3401_v61  ;;  %4873 = vmatpush3.msra.mxu1 %v3403_v7 }
 0x164   : > { %v2177_v14 = vpop.f32.mrf.mxu0  ;;  %v4778_v15 = vpop.f32.mrf.mxu1  ;;  %4894 = vmatpush3.msra.mxu0 %v3401_v61  ;;  %4875 = vmatmul.mubr.f32.vlgmr.msra.gmra.mxu1 %v5568_v17 }
 0x165   : > { %v2178_v16 = vadd.f32 %v2177_v14, %v2093_v11  ;;  %v2263_v18 = vadd.f32 %v4778_v15, %v2184_v13  ;;  %4884 = vmatprep.subr.mxu1 %v5630_v47  ;;  %4895 = vmatprep.mubr.f32.mxu0 %v5553_v8 }
 0x166   : > { %v2256_v19 = vpop.f32.mrf.mxu1  ;;  %4885 = vmatpush3.msra.mxu1 %v5630_v47  ;;  %4896 = vmatmul.mubr.f32.vlgmr.msra.gmra.mxu0 %v5568_v17 }
 0x167   : > { %v3807_v20 = vand.u32 4294901760, %v2263_v18  ;;  %v2257_v21 = vadd.f32 %v2256_v19, %v2178_v16  ;;  %4886 = vmatprep.subr.mxu1 %v5637_v51  ;;  %4888 = vmatprep.mubr.f32.mxu1 %v5560_v3 }
 0x168   : > { %4887 = vmatpush3.msra.mxu1 %v5637_v51  ;;  %4909 = vmatprep.mubr.f32.mxu0 %v5564_v10 }
 0x169   : > { %v3895_v22 = vsub.f32 %v2263_v18, %v3807_v20  ;;  %v3810_v24 = vand.u32 4294901760, %v2257_v21  ;;  %4905 = vmatprep.subr.mxu0 %v3807_v20  ;;  %4889 = vmatmul.mubr.f32.vlgmr.msra.gmra.mxu1 %v5574_v30 }
 0x16a   : > { %4906 = vmatpush3.msra.mxu0 %v3807_v20  ;;  %4898 = vmatprep.subr.mxu1 %v5630_v47 }
 0x16b   : > { %v3902_v25 = vsub.f32 %v2257_v21, %v3810_v24  ;;  %4907 = vmatprep.subr.mxu0 %v3810_v24  ;;  %4899 = vmatpush3.msra.mxu1 %v5630_v47  ;;  %v3896_v26 = vand.u32 4294901760, %v3895_v22 }
 0x16c   : > { %4908 = vmatpush3.msra.mxu0 %v3810_v24  ;;  %4900 = vmatprep.subr.mxu1 %v5637_v51 }
 0x16d   : > { %4919 = vmatprep.subr.mxu0 %v3895_v22  ;;  %4910 = vmatmul.mubr.f32.vlgmr.msra.gmra.mxu0 %v5584_v44  ;;  %v3897_v10 = vsub.f32 %v3895_v22, %v3896_v26  ;;  %v3903_v27 = vand.u32 4294901760, %v3902_v25 }
 0x16e   : > { %4920 = vmatpush3.msra.mxu0 %v3895_v22  ;;  %4901 = vmatpush3.msra.mxu1 %v5637_v51 }
 0x16f   : > { %4921 = vmatprep.subr.mxu0 %v3902_v25  ;;  %4902 = vmatprep.mubr.f32.mxu1 %v5553_v8  ;;  %v3898_v28 = vand.u32 4294901760, %v3897_v10  ;;  %v3904_v29 = vsub.f32 %v3902_v25, %v3903_v27 }
 0x170   : > { %4922 = vmatpush3.msra.mxu0 %v3902_v25  ;;  %4903 = vmatmul.mubr.f32.vlgmr.msra.gmra.mxu1 %v5568_v17 }
 0x171   : > { %4912 = vmatprep.subr.mxu1 %v3898_v28  ;;  %4923 = vmatprep.mubr.f32.mxu0 %v5556_v9  ;;  %v3905_v31 = vand.u32 4294901760, %v3904_v29 }
 0x172   : > { %4933 = vmatprep.subr.mxu0 %v3896_v26  ;;  %4913 = vmatpush3.msra.mxu1 %v3898_v28 }
 0x173   : > { %4924 = vmatmul.mubr.f32.vlgmr.msra.gmra.mxu0 %v5571_v23  ;;  %4914 = vmatprep.subr.mxu1 %v3905_v31 }
 0x174   : > { %4934 = vmatpush3.msra.mxu0 %v3896_v26  ;;  %4915 = vmatpush3.msra.mxu1 %v3905_v31 }
 0x175   : > { %4935 = vmatprep.subr.mxu0 %v3903_v27  ;;  %4916 = vmatprep.mubr.f32.mxu1 %v5553_v8 }
 0x176   : > { %4936 = vmatpush3.msra.mxu0 %v3903_v27  ;;  %4917 = vmatmul.mubr.f32.vlgmr.msra.gmra.mxu1 %v5568_v17 }
 0x177   : > { %4926 = vmatprep.subr.mxu1 %v3807_v20  ;;  %4930 = vmatprep.mubr.f32.mxu1 %v5560_v3 }
 0x178   : > { %4927 = vmatpush3.msra.mxu1 %v3807_v20  ;;  %4937 = vmatprep.mubr.f32.mxu0 %v5553_v8 }
 0x179   : > { %4928 = vmatprep.subr.mxu1 %v3810_v24  ;;  %4938 = vmatmul.mubr.f32.vlgmr.msra.gmra.mxu0 %v5568_v17 }
 0x17a   : > { %4929 = vmatpush3.msra.mxu1 %v3810_v24 }
 0x17b   : > { %4931 = vmatmul.mubr.f32.vlgmr.msra.gmra.mxu1 %v5574_v30  ;;  %4940 = vmatprep.subr.mxu1 %v3807_v20 }
 0x17c   : > { %4941 = vmatpush3.msra.mxu1 %v3807_v20  ;;  %4944 = vmatprep.mubr.f32.mxu1 %v5553_v8 }
 0x17d   : > { %4942 = vmatprep.subr.mxu1 %v3810_v24 }
 0x17e   : > { %4943 = vmatpush3.msra.mxu1 %v3810_v24 }
 0x17f   : > { %4945 = vmatmul.mubr.f32.vlgmr.msra.gmra.mxu1 %v5568_v17 }
 0x1f8   : > { %v4785_v9 = vpop.f32.mrf.mxu0 }
 0x1fa   : > { %v2345_v23 = vpop.f32.mrf.mxu0 }
 0x1fd   : > { %v4799_v3 = vpop.f32.mrf.mxu0 }
 0x1ff   : > { %v2518_v44 = vpop.f32.mrf.mxu0 }
 0x200   : > { %v4792_v32 = vpop.f32.mrf.mxu1 }
 0x201   : > { %v2443_v33 = vadd.f32 %v4792_v32, %v4785_v9 }
 0x202   : > { %v2436_v34 = vpop.f32.mrf.mxu1  ;;  %v4813_v35 = vpop.f32.mrf.mxu0 }
 0x203   : > { %v2526_v36 = vadd.f32 %v4799_v3, %v2443_v33  ;;  %v2437_v37 = vadd.f32 %v2436_v34, %v2345_v23 }
 0x204   : > { %v2685_v40 = vpop.f32.mrf.mxu0 }
 0x205   : > { %v2519_v30 = vadd.f32 %v2518_v44, %v2437_v37  ;;  %v4806_v38 = vpop.f32.mrf.mxu1 }
 0x206   : > { %v2609_v39 = vadd.f32 %v4806_v38, %v2526_v36 }
 0x207   : > { %v2600_v8 = vpop.f32.mrf.mxu1 }
 0x208   : > { %v2692_v41 = vadd.f32 %v4813_v35, %v2609_v39  ;;  %v2601_v42 = vadd.f32 %v2600_v8, %v2519_v30 }
 0x20a   : > { %v2686_v43 = vadd.f32 %v2685_v40, %v2601_v42  ;;  %v4827_v17 = vpop.f32.mrf.mxu0 }
 0x20b   : > { %v4820_v45 = vpop.f32.mrf.mxu1 }
 0x20c   : > { %v2771_v46 = vadd.f32 %v4820_v45, %v2692_v41  ;;  %v2847_v47 = vpop.f32.mrf.mxu0 }
 0x20d   : > { %v2764_v48 = vpop.f32.mrf.mxu1 }
 0x20e   : > { %4281 = vst.msk [vmem:[%s5682_s18 + $0x8] sm:$0xff] %vm233_vm0, %v2771_v46  ;;  %v2765_v49 = vadd.f32 %v2764_v48, %v2686_v43 }
 0x20f   : > { %v4841_v50 = vpop.f32.mrf.mxu0 }
 0x210   : > { %4280 = vst.msk [vmem:[%s5682_s18] sm:$0xff] %vm233_vm0, %v2765_v49 }
 0x211   : > { %v3020_v51 = vpop.f32.mrf.mxu0 }
 0x212   : > { %v4834_v52 = vpop.f32.mrf.mxu1 }
 0x213   : > { %v2945_v53 = vadd.f32 %v4834_v52, %v4827_v17 }
 0x214   : > { %v2938_v54 = vpop.f32.mrf.mxu1  ;;  %v4855_v55 = vpop.f32.mrf.mxu0 }
 0x215   : > { %v3028_v56 = vadd.f32 %v4841_v50, %v2945_v53  ;;  %v2939_v57 = vadd.f32 %v2938_v54, %v2847_v47 }
 0x216   : > { %v3187_v61 = vpop.f32.mrf.mxu0 }
 0x217   : > { %v3021_v58 = vadd.f32 %v3020_v51, %v2939_v57  ;;  %v4848_v59 = vpop.f32.mrf.mxu1 }
 0x218   : > { %v3111_v60 = vadd.f32 %v4848_v59, %v3028_v56 }
 0x219   : > { %v3102_v62 = vpop.f32.mrf.mxu1 }
 0x21a   : > { %v3194_v63 = vadd.f32 %v4855_v55, %v3111_v60  ;;  %v3103_v0 = vadd.f32 %v3102_v62, %v3021_v58 }
 0x21c   : > { %v3188_v1 = vadd.f32 %v3187_v61, %v3103_v0  ;;  %v4869_v2 = vpop.f32.mrf.mxu0 }
 0x21d   : > { %v4862_v5 = vpop.f32.mrf.mxu1 }
 0x21e   : > { %v3273_v6 = vadd.f32 %v4862_v5, %v3194_v63  ;;  %v3349_v7 = vpop.f32.mrf.mxu0 }
 0x21f   : > { %v3266_v4 = vpop.f32.mrf.mxu1 }
 0x220   : > { %4283 = vst.msk [vmem:[%s5682_s18 + $0x18] sm:$0xff] %vm233_vm0, %v3273_v6  ;;  %v3267_v11 = vadd.f32 %v3266_v4, %v3188_v1 }
 0x221   : > { %v4883_v12 = vpop.f32.mrf.mxu0 }
 0x222   : > { %4282 = vst.msk [vmem:[%s5682_s18 + $0x10] sm:$0xff] %vm233_vm0, %v3267_v11 }
 0x223   : > { %v3522_v13 = vpop.f32.mrf.mxu0 }
 0x224   : > { %v4876_v14 = vpop.f32.mrf.mxu1 }
 0x225   : > { %v3447_v15 = vadd.f32 %v4876_v14, %v4869_v2 }
 0x226   : > { %v3440_v16 = vpop.f32.mrf.mxu1  ;;  %v4897_v18 = vpop.f32.mrf.mxu0 }
 0x227   : > { %v3530_v19 = vadd.f32 %v4883_v12, %v3447_v15  ;;  %v3441_v20 = vadd.f32 %v3440_v16, %v3349_v7 }
 0x228   : > { %v3689_v24 = vpop.f32.mrf.mxu0 }
 0x229   : > { %v3523_v21 = vadd.f32 %v3522_v13, %v3441_v20  ;;  %v4890_v22 = vpop.f32.mrf.mxu1 }
 0x22a   : > { %v3613_v25 = vadd.f32 %v4890_v22, %v3530_v19 }
 0x22b   : > { %v3604_v26 = vpop.f32.mrf.mxu1 }
 0x22c   : > { %v3605_v10 = vadd.f32 %v3604_v26, %v3523_v21  ;;  %v3696_v27 = vadd.f32 %v4897_v18, %v3613_v25 }
 0x22d   : > { %v4911_v28 = vpop.f32.mrf.mxu0 }
 0x22e   : > { %v3690_v29 = vadd.f32 %v3689_v24, %v3605_v10 }
 0x22f   : > { %v3851_v31 = vpop.f32.mrf.mxu0 }
 0x230   : > { %v4904_v9 = vpop.f32.mrf.mxu1 }
 0x231   : > { %v3775_v23 = vadd.f32 %v4904_v9, %v3696_v27 }
 0x232   : > { %v3768_v3 = vpop.f32.mrf.mxu1 }
 0x233   : > { %4285 = vst.msk [vmem:[%s5682_s18 + $0x28] sm:$0xff] %vm233_vm0, %v3775_v23  ;;  %v3769_v44 = vadd.f32 %v3768_v3, %v3690_v29  ;;  %v4925_v32 = vpop.f32.mrf.mxu0 }
 0x235   : > { %4284 = vst.msk [vmem:[%s5682_s18 + $0x20] sm:$0xff] %vm233_vm0, %v3769_v44  ;;  %v4024_v35 = vpop.f32.mrf.mxu0 }
 0x236   : > { %v4918_v33 = vpop.f32.mrf.mxu1 }
 0x237   : > { %v3949_v34 = vadd.f32 %v4918_v33, %v4911_v28 }
 0x238   : > { %v3942_v36 = vpop.f32.mrf.mxu1 }
 0x239   : > { %v4032_v37 = vadd.f32 %v4925_v32, %v3949_v34  ;;  %v3943_v30 = vadd.f32 %v3942_v36, %v3851_v31  ;;  %v4939_v40 = vpop.f32.mrf.mxu0 }
 0x23b   : > { %v4025_v38 = vadd.f32 %v4024_v35, %v3943_v30  ;;  %v4932_v39 = vpop.f32.mrf.mxu1  ;;  %v4191_v17 = vpop.f32.mrf.mxu0 }
 0x23c   : > { %v4115_v8 = vadd.f32 %v4932_v39, %v4032_v37 }
 0x23d   : > { %v4106_v41 = vpop.f32.mrf.mxu1 }
 0x23e   : > { %v4198_v42 = vadd.f32 %v4939_v40, %v4115_v8  ;;  %v4107_v43 = vadd.f32 %v4106_v41, %v4025_v38 }
 0x23f   : > { %v4946_v45 = vpop.f32.mrf.mxu1 }
 0x240   : > { %v4192_v46 = vadd.f32 %v4191_v17, %v4107_v43  ;;  %v4277_v47 = vadd.f32 %v4946_v45, %v4198_v42 }
 0x241   : > { %v4270_v48 = vpop.f32.mrf.mxu1 }
 0x242   : > { %4287 = vst.msk [vmem:[%s5682_s18 + $0x38] sm:$0xff] %vm233_vm0, %v4277_v47  ;;  %v4271_v49 = vadd.f32 %v4270_v48, %v4192_v46 }
 0x244   : > { %4286 = vst.msk [vmem:[%s5682_s18 + $0x30] sm:$0xff] %vm233_vm0, %v4271_v49 }
 0x245   : > { %5111 = shalt.err (!%p5108_p3)
}
 0x246   : > { %s5112_s17 = scalar_lea.hbm %s5701_s29, 1024  ;;  %s5116_s26 = scalar_lea.hbm %s5753_s3, 2048 }
 0x247   : > { %p5113_p11 = scmp.ne.s32.totalorder %s5701_s29, %s5112_s17  ;;  %p5117_p4 = scmp.lt.s32.totalorder %s5701_s29, %s5753_s3 }
 0x248   : > { %p5118_p6 = scmp.lt.s32.totalorder %s5116_s26, %s5112_s17 }
 0x249   : > { %p5114_p9 = pnand %p5113_p11, %p5768_p2 }
 0x24a   : > { %p5119_p8 = por %p5118_p6, %p5117_p4 }
 0x24b   : > { %p5115_p1 = pneg %p5114_p9 }
 0x24d   : > { %p5120_p5 = pnand %p5119_p8, %p5115_p1 }
 0x24f   : > { %5123 = shalt.err (!%p5120_p5)
}
 0x250   : > { %s5174_s30 = smov 128   ;;  %s5175_s18 = smov 8  }
 0x251   : > { %4957 = dma.vmem_to_hbm [thread:$0]  (%p5768_p2), %s5703_s27, 1024, %s5701_s29, %s4289_s16, %s5174_s30, %s5174_s30, %s5175_s18  }
 0x252 PF: > { %s4318_s20 = sand.u32 1, %s5154_s12   ;;  %p5769_p7 = scmp.ne.s32.totalorder %s5759_s19, 0 }
 0x253   : > { %p5770_p12 = scmp.ge.s32.totalorder %s5166_s15, 2  ;;  %s4319_s28 = scalar_lea.sflag [#allocation4], %s4318_s20 }
 0x255   : > { %p4971_p13 = pnand %p5770_p12, %p5769_p7 }
 0x257   : > { %p4972_p0 = pneg %p4971_p13 }
 0x259   : > { %5149 = dma.done.wait (%p4972_p0), %s4319_s28, 1024  }
 0x25a   : > { %5151 = vsyncadd (%p4972_p0), %s4319_s28, 4294966272  ;;  %p17_p10 = scmp.ge.s32.totalorder %s5274_s7, 4   ;;  %s5771_s12 = smov %s5158_s13 }
 0x25b   : > { %s5772_s13 = smov %s5162_s14  ;;  %s5773_s14 = smov %s5290_s11 }
 0x25c   : > { %s5774_s15 = smov %s5274_s7  ;;  %19 = sbr.rel (!%p17_p10) target bundleno = 6 (0x6), region = 85 }
 0x261   :  { %4324 = vsyncpa [#allocation3], 1 }
 0x262   :  { %4326 = vsyncpa [#allocation3 + $0x1], 1 }
 0x263   :  { %4327 = vsyncpa [#allocation6], 1 }
 0x264   :  { %4328 = vsyncpa [#allocation4], 1 }
 0x265   :  { %4330 = vsyncpa [#allocation4 + $0x1], 1 }

</bundles_post_ra>
